<compile_context>
chip_gen: v6e
topology: v6e:2x2x1
jax: 0.10.0
libtpu: 0.0.40
codegen_flags: <defaults>
</compile_context>

<pallas_src>
import functools
import math

import jax
import jax.numpy as jnp
from jax.experimental import pallas as pl
from jax.experimental.pallas import tpu as pltpu


# VMEM sizing: keep the per-step working set comfortably inside v7x's 64 MiB
# per-TensorCore VMEM (v5e/v6e have 128 MiB, so this is conservative there) and
# raise the scoped limit above the 16/32 MiB defaults.
_VMEM_LIMIT_BYTES = 48 * 1024 * 1024
_TILE_VMEM_BUDGET = 24 * 1024 * 1024
_TARGET_MATMUL_ROWS = 1024   # aim for >= ~1K output rows (MXU M-dim) per step


# ----------------------------------------------------------------------------
# In-kernel conv helper
# ----------------------------------------------------------------------------
def _conv3x3_tile(rows, w_ref, b_ref, rows_out, width):
    """3x3 conv over a row tile that already carries its top/bottom halo rows.

    rows    : (rows_out + 2, width, Cin) bf16 value (zero rows at image borders)
    w_ref   : Ref (3, 3*Cin, Cout) bf16  -- per-dy weights, K ordered (dx, cin)
    b_ref   : Ref (1, Cout) f32
    returns : (rows_out * width, Cout) f32

    Computed as 3 accumulating MXU matmuls with K = 3*Cin (one per dy).  The
    dx shifts use width-aligned slices plus a zero edge column, so the im2col
    blow-up is 3x (not 9x) and no (W+2)-wide buffer is materialized.
    """
    cin = rows.shape[-1]
    cout = w_ref.shape[-1]
    zcol = jnp.zeros((rows.shape[0], 1, cin), rows.dtype)
    left = jnp.concatenate([zcol, rows[:, :width - 1, :]], axis=1)   # col x-1
    right = jnp.concatenate([rows[:, 1:, :], zcol], axis=1)          # col x+1
    shifted = jnp.concatenate([left, rows, right], axis=-1)          # (R+2,W,3Cin)

    acc = jnp.zeros((rows_out * width, cout), jnp.float32)
    for dy in range(3):
        patch = shifted[dy:dy + rows_out].reshape(rows_out * width, 3 * cin)
        acc = acc + jnp.dot(patch, w_ref[dy],
                            preferred_element_type=jnp.float32)
    return acc + b_ref[...].astype(jnp.float32)


# ----------------------------------------------------------------------------
# Pallas kernels
# ----------------------------------------------------------------------------
def _conv_kernel(*refs, TH, W, relu, res_scale, has_residual):
    """Single 3x3 conv (+optional ReLU, +optional fused residual epilogue)."""
    if has_residual:
        xb_ref, xt_ref, xbo_ref, w_ref, b_ref, r_ref, o_ref = refs
    else:
        xb_ref, xt_ref, xbo_ref, w_ref, b_ref, o_ref = refs
        r_ref = None

    t = pl.program_id(1)
    is_first = t == 0
    is_last = t == pl.num_programs(1) - 1

    body = xb_ref[0]                                    # (TH, W, Cin) bf16
    top = xt_ref[0]                                     # (1, W, Cin)
    bot = xbo_ref[0]                                    # (1, W, Cin)
    # in-kernel zero halo at the image borders (no jnp.pad HBM round trip)
    top = jnp.where(is_first, jnp.zeros_like(top), top)
    bot = jnp.where(is_last, jnp.zeros_like(bot), bot)
    rows = jnp.concatenate([top, body, bot], axis=0)    # (TH+2, W, Cin)

    acc = _conv3x3_tile(rows, w_ref, b_ref, TH, W)      # (TH*W, Cout) f32
    if relu:
        acc = jnp.maximum(acc, 0.0)
    if has_residual:
        res = r_ref[0].reshape(TH * W, -1).astype(jnp.float32)
        acc = res + jnp.float32(res_scale) * acc
    o_ref[0] = acc.reshape(TH, W, -1).astype(o_ref.dtype)


def _resblock_kernel(xb_ref, xt0_ref, xt1_ref, xb0_ref, xb1_ref,
                     w1_ref, b1_ref, w2_ref, b2_ref, o_ref, *, TH, W, res_scale):
    """Fused ResBlock: out = x + res_scale * conv2(relu(conv1(x))).

    Uses a 2-row input halo: conv1 is evaluated on TH+2 rows so conv2's
    receptive field is fully covered in-tile; the intermediate never goes to
    HBM.  Requires TH >= 2 (enforced by the wrapper).
    """
    t = pl.program_id(1)
    is_first = t == 0
    is_last = t == pl.num_programs(1) - 1

    body = xb_ref[0]                                              # (TH, W, C)
    top = jnp.concatenate([xt0_ref[0], xt1_ref[0]], axis=0)       # (2, W, C)
    bot = jnp.concatenate([xb0_ref[0], xb1_ref[0]], axis=0)       # (2, W, C)
    top = jnp.where(is_first, jnp.zeros_like(top), top)
    bot = jnp.where(is_last, jnp.zeros_like(bot), bot)
    rows = jnp.concatenate([top, body, bot], axis=0)              # (TH+4, W, C)

    # conv1 + ReLU over TH+2 output rows (tile rows plus one halo row each side)
    h = _conv3x3_tile(rows, w1_ref, b1_ref, TH + 2, W)
    h = jnp.maximum(h, 0.0)
    c_mid = w1_ref.shape[-1]
    h = h.astype(jnp.bfloat16).reshape(TH + 2, W, c_mid)

    # conv2 zero-pads the *intermediate* feature map at the image borders, so
    # the intermediate's halo rows must be zero there.  Only the two edge rows
    # are touched (no full-tile iota / select).
    edge = jnp.zeros((1, W, c_mid), h.dtype)
    h = jnp.concatenate([
        jnp.where(is_first, edge, h[:1]),
        h[1:TH + 1],
        jnp.where(is_last, edge, h[TH + 1:]),
    ], axis=0)

    acc = _conv3x3_tile(h, w2_ref, b2_ref, TH, W)                 # (TH*W, C) f32
    res = body.reshape(TH * W, -1).astype(jnp.float32)
    out = res + jnp.float32(res_scale) * acc
    o_ref[0] = out.reshape(TH, W, -1).astype(o_ref.dtype)


# ----------------------------------------------------------------------------
# Tile selection (VMEM-budget-driven)
# ----------------------------------------------------------------------------
def _tile_vmem_bytes(th, W, cin, cout, fused):
    bf, f4 = 2, 4
    halo = 4 if fused else 2
    body_io = 2 * th * W * (cin + cout) * bf       # double-buffered in/out blocks
    halos = 2 * halo * W * cin * bf
    rows = (th + halo) * W * cin * bf              # halo-extended input rows
    shifted = 3 * rows                             # dx-shift concat (3x, not 9x)
    patch = th * W * 3 * cin * bf                  # per-dy matmul operand
    acc = th * W * cout * f4
    wgt = 2 * 2 * 9 * cin * cout * bf
    total = body_io + halos + rows + shifted + patch + acc + wgt
    if fused:
        mid = (th + 2) * W * cout
        total += mid * (f4 + bf) + 3 * mid * bf + th * W * 3 * cout * bf
    return total


def _pick_tile_rows(H, W, cin, cout, *, batch, fused=False,
                    vmem_budget=_TILE_VMEM_BUDGET,
                    target_rows=_TARGET_MATMUL_ROWS):
    """Pick a row-tile height TH (divisor of H) from a VMEM budget.

    Prefers the smallest tile whose MXU M-dim (TH*W) reaches `target_rows`
    (amortizes per-grid-step overhead), otherwise the largest that fits.
    Keeps >= 2 grid steps when batch == 1 so both v7x TensorCores get work.
    """
    divs = [d for d in range(1, H + 1) if H % d == 0]
    fit = [d for d in divs if _tile_vmem_bytes(d, W, cin, cout, fused) <= vmem_budget]
    if not fit:
        # TODO(synk): width-tiling grid axis so this fallback never triggers.
        fit = divs[:1]
    choice = next((d for d in fit if d * W >= target_rows), fit[-1])
    if batch * (H // choice) < 2:
        smaller = [d for d in fit if d < choice]
        if smaller:
            choice = smaller[-1]
    return choice


# ----------------------------------------------------------------------------
# Host-side wrappers (BlockSpecs / grid)
# ----------------------------------------------------------------------------
def conv3x3(x, w, b, *, relu=False, residual=None, res_scale=1.0,
            tile_rows=None):
    """3x3 / stride-1 / pad-1 conv.  x: (N, H, W, Cin) NHWC bf16.

    w: (3, 3*Cin, Cout) bf16 (per-dy weights, K ordered (dx, cin)), b: (1, Cout)
    f32.  Optional fused epilogue: out = residual + res_scale * conv(x).
    """
    N, H, W, Cin = x.shape
    Cout = w.shape[-1]
    assert w.shape == (3, 3 * Cin, Cout), w.shape
    TH = tile_rows or _pick_tile_rows(H, W, Cin, Cout, batch=N)
    if H % TH:
        raise ValueError(f"tile_rows={TH} must divide H={H}")
    nH = H // TH

    in_specs = [
        # tile body
        pl.BlockSpec((1, TH, W, Cin), lambda n, t: (n, t, 0, 0)),
        # 1-row halo above / below (clamped; masked to zero at image borders)
        pl.BlockSpec((1, 1, W, Cin),
                     lambda n, t: (n, jnp.maximum(t * TH - 1, 0), 0, 0)),
        pl.BlockSpec((1, 1, W, Cin),
                     lambda n, t: (n, jnp.minimum((t + 1) * TH, H - 1), 0, 0)),
        pl.BlockSpec((3, 3 * Cin, Cout), lambda n, t: (0, 0, 0)),
        pl.BlockSpec((1, Cout), lambda n, t: (0, 0)),
    ]
    args = [x, x, x, w, b]
    if residual is not None:
        in_specs.append(pl.BlockSpec((1, TH, W, Cout),
                                     lambda n, t: (n, t, 0, 0)))
        args.append(residual)

    kernel = functools.partial(
        _conv_kernel, TH=TH, W=W, relu=relu, res_scale=float(res_scale),
        has_residual=residual is not None)

    return pl.pallas_call(
        kernel,
        out_shape=jax.ShapeDtypeStruct((N, H, W, Cout), x.dtype),
        grid=(N, nH),
        in_specs=in_specs,
        out_specs=pl.BlockSpec((1, TH, W, Cout), lambda n, t: (n, t, 0, 0)),
        compiler_params=pltpu.CompilerParams(
            dimension_semantics=("parallel", "parallel"),
            vmem_limit_bytes=_VMEM_LIMIT_BYTES),
    )(*args)


def resblock3x3(x, w1, b1, w2, b2, *, res_scale=1.0, tile_rows=None):
    """Fused ResBlock: x + res_scale * conv2(relu(conv1(x))) in one pallas_call."""
    N, H, W, C = x.shape
    TH = tile_rows or _pick_tile_rows(H, W, C, C, batch=N, fused=True)
    if TH < 2 or H % TH:
        # Fused kernel needs >= 2-row tiles; fall back to two convs with a
        # fused residual epilogue on the second one.
        t = conv3x3(x, w1, b1, relu=True)
        return conv3x3(t, w2, b2, residual=x, res_scale=res_scale)
    nH = H // TH

    body_spec = pl.BlockSpec((1, TH, W, C), lambda n, t: (n, t, 0, 0))

    def _halo(off):
        return pl.BlockSpec((1, 1, W, C), lambda n, t: (n, off(t), 0, 0))

    top0 = _halo(lambda t: jnp.maximum(t * TH - 2, 0))
    top1 = _halo(lambda t: jnp.maximum(t * TH - 1, 0))
    bot0 = _halo(lambda t: jnp.minimum((t + 1) * TH, H - 1))
    bot1 = _halo(lambda t: jnp.minimum((t + 1) * TH + 1, H - 1))
    w_spec = pl.BlockSpec((3, 3 * C, C), lambda n, t: (0, 0, 0))
    b_spec = pl.BlockSpec((1, C), lambda n, t: (0, 0))

    kernel = functools.partial(
        _resblock_kernel, TH=TH, W=W, res_scale=float(res_scale))

    return pl.pallas_call(
        kernel,
        out_shape=jax.ShapeDtypeStruct((N, H, W, C), x.dtype),
        grid=(N, nH),
        in_specs=[body_spec, top0, top1, bot0, bot1,
                  w_spec, b_spec, w_spec, b_spec],
        out_specs=pl.BlockSpec((1, TH, W, C), lambda n, t: (n, t, 0, 0)),
        compiler_params=pltpu.CompilerParams(
            dimension_semantics=("parallel", "parallel"),
            vmem_limit_bytes=_VMEM_LIMIT_BYTES),
    )(x, x, x, x, x, w1, b1, w2, b2)


# ----------------------------------------------------------------------------
# Glue ops (pure layout / parameter setup)
# ----------------------------------------------------------------------------
def pixel_shuffle(x, r):
    """PyTorch-convention PixelShuffle in NHWC: (N,H,W,C*r*r) -> (N,H*r,W*r,C)."""
    # TODO(synk): fuse into the up-conv's output write to save one HBM pass.
    N, H, W, Crr = x.shape
    C = Crr // (r * r)
    x = x.reshape(N, H, W, C, r, r)
    x = x.transpose(0, 1, 4, 2, 5, 3)
    return x.reshape(N, H * r, W * r, C)


def _conv_param(key, cin, cout):
    kw, kb = jax.random.split(key)
    fan_in = 9 * cin
    w = jax.random.normal(kw, (3, 3, cin, cout), jnp.float32) / math.sqrt(fan_in)
    b = jax.random.normal(kb, (1, cout), jnp.float32) * 0.01
    # store per-dy weights with K ordered (dx, cin), bf16 for the MXU/HBM path
    return {"w": w.reshape(3, 3 * cin, cout).astype(jnp.bfloat16), "b": b}


def init_edsr_params(key, *, scale, depth, n_colors, n_feats):
    keys = iter(jax.random.split(key, 3 + 2 * depth + 4))
    params = {
        "head": _conv_param(next(keys), n_colors, n_feats),
        "resblocks": [
            {"conv1": _conv_param(next(keys), n_feats, n_feats),
             "conv2": _conv_param(next(keys), n_feats, n_feats)}
            for _ in range(depth)
        ],
        "body": _conv_param(next(keys), n_feats, n_feats),
        "tail": _conv_param(next(keys), n_feats, n_colors),
    }
    log_scale = math.log(scale, 2)
    if int(log_scale) == log_scale:
        params["up"] = [_conv_param(next(keys), n_feats, 4 * n_feats)
                        for _ in range(int(log_scale))]
        params["up_r"] = 2
    elif scale == 3:
        params["up"] = [_conv_param(next(keys), n_feats, 9 * n_feats)]
        params["up_r"] = 3
    else:
        raise NotImplementedError
    return params


# ----------------------------------------------------------------------------
# Pure-JAX reference ops (same math & same bf16 rounding points, no Pallas)
# ----------------------------------------------------------------------------
def _conv3x3_ref(x, w, b, *, relu=False, residual=None, res_scale=1.0):
    N, H, W, Cin = x.shape
    Cout = w.shape[-1]
    w4 = w.reshape(3, 3, Cin, Cout)
    xp = jnp.pad(x, ((0, 0), (1, 1), (1, 1), (0, 0)))
    acc = jnp.zeros((N, H, W, Cout), jnp.float32)
    for dy in range(3):
        for dx in range(3):
            acc = acc + jnp.einsum(
                "nhwc,co->nhwo", xp[:, dy:dy + H, dx:dx + W, :], w4[dy, dx],
                preferred_element_type=jnp.float32)
    acc = acc + b.reshape(1, 1, 1, Cout)
    if relu:
        acc = jnp.maximum(acc, 0.0)
    if residual is not None:
        acc = residual.astype(jnp.float32) + res_scale * acc
    return acc.astype(jnp.bfloat16)


def _resblock_ref(x, w1, b1, w2, b2, *, res_scale=1.0):
    t = _conv3x3_ref(x, w1, b1, relu=True)
    return _conv3x3_ref(t, w2, b2, residual=x, res_scale=res_scale)


# ----------------------------------------------------------------------------
# EDSR forward
# ----------------------------------------------------------------------------
def edsr_forward(x_nchw, params, *, res_scale=1.0, use_pallas=True):
    """EDSR forward.  Input / output are NCHW f32 like the PyTorch module."""
    conv = conv3x3 if use_pallas else _conv3x3_ref
    resb = resblock3x3 if use_pallas else _resblock_ref

    x = jnp.transpose(x_nchw, (0, 2, 3, 1)).astype(jnp.bfloat16)  # NCHW -> NHWC

    # head
    x = conv(x, params["head"]["w"], params["head"]["b"])

    # resblocks (fused) + trailing body conv with fused long-skip add
    r = x
    for blk in params["resblocks"]:
        r = resb(r, blk["conv1"]["w"], blk["conv1"]["b"],
                 blk["conv2"]["w"], blk["conv2"]["b"], res_scale=res_scale)
    x = conv(r, params["body"]["w"], params["body"]["b"],
             residual=x, res_scale=1.0)

    # recon: sub-pixel upsampler + tail conv
    rr = params["up_r"]
    for up in params["up"]:
        x = conv(x, up["w"], up["b"])
        x = pixel_shuffle(x, rr)
    x = conv(x, params["tail"]["w"], params["tail"]["b"])

    # TODO(synk): lane-dense NCHW out_spec for the tail conv would remove this.
    return jnp.transpose(x, (0, 3, 1, 2)).astype(jnp.float32)     # NHWC -> NCHW


# ----------------------------------------------------------------------------
# Demo / correctness check
# ----------------------------------------------------------------------------
if __name__ == "__main__":
    # Small, deterministic configuration (module defaults, scaled down):
    SCALE, DEPTH, N_COLORS, N_FEATS = 2, 2, 3, 32
    N, H, W = 2, 16, 16

    root = jax.random.PRNGKey(0)
    k_x, k_p = jax.random.split(root)
    x = jax.random.normal(k_x, (N, N_COLORS, H, W), jnp.float32)   # NCHW input
    params = init_edsr_params(
        k_p, scale=SCALE, depth=DEPTH, n_colors=N_COLORS, n_feats=N_FEATS)

    out = jax.block_until_ready(edsr_forward(x, params))
    assert out.shape == (N, N_COLORS, H * SCALE, W * SCALE), out.shape

    # Sanity check against a pure-JAX reference with identical bf16 rounding
    # points (tolerance covers MXU vs XLA accumulation-order differences and
    # the occasional 1-ulp bf16 rounding flip they can induce).
    ref = jax.block_until_ready(edsr_forward(x, params, use_pallas=False))
    max_err = float(jnp.max(jnp.abs(out - ref)))
    mean_err = float(jnp.mean(jnp.abs(out - ref)))
    assert max_err < 1e-1 and mean_err < 1e-2, (max_err, mean_err)

    print("KERNEL_OK")
</pallas_src>

<mosaic_0001>
module attributes {stable_mosaic.version = 11 : i64} {
  func.func @_conv_kernel(%arg0: i32, %arg1: i32, %arg2: memref<1x16x16x3xbf16, #tpu.memory_space<vmem>>, %arg3: memref<1x1x16x3xbf16, #tpu.memory_space<vmem>>, %arg4: memref<1x1x16x3xbf16, #tpu.memory_space<vmem>>, %arg5: memref<3x9x32xbf16, #tpu.memory_space<vmem>>, %arg6: memref<1x32xf32, #tpu.memory_space<vmem>>, %arg7: memref<1x16x16x32xbf16, #tpu.memory_space<vmem>>) attributes {dimension_semantics = [#tpu.dimension_semantics<parallel>, #tpu.dimension_semantics<parallel>], iteration_bounds = array<i64: 2, 1>, scalar_prefetch = 0 : i64, scratch_operands = 0 : i64, tpu.core_type = #tpu.core_type<tc>, window_params = [{transform_indices = @transform_0, window_bounds = array<i64: 1, 16, 16, 3>}, {transform_indices = @transform_1, window_bounds = array<i64: 1, 1, 16, 3>}, {transform_indices = @transform_2, window_bounds = array<i64: 1, 1, 16, 3>}, {pipeline_mode = #tpu.pipeline_mode<synchronous>, transform_indices = @transform_3, window_bounds = array<i64: 3, 9, 32>}, {pipeline_mode = #tpu.pipeline_mode<synchronous>, transform_indices = @transform_4, window_bounds = array<i64: 1, 32>}, {transform_indices = @transform_5, window_bounds = array<i64: 1, 16, 16, 32>}]} {
    %c0_i32 = arith.constant 0 : i32
    %0 = arith.cmpi eq, %arg1, %c0_i32 : i32
    %c0_i32_0 = arith.constant 0 : i32
    %1 = arith.cmpi eq, %arg1, %c0_i32_0 : i32
    %c0 = arith.constant 0 : index
    %c0_1 = arith.constant 0 : index
    %c0_2 = arith.constant 0 : index
    %c0_3 = arith.constant 0 : index
    %2 = vector.load %arg2[%c0, %c0_1, %c0_2, %c0_3] : memref<1x16x16x3xbf16, #tpu.memory_space<vmem>>, vector<1x16x16x3xbf16>
    %3 = vector.shape_cast %2 : vector<1x16x16x3xbf16> to vector<16x16x3xbf16>
    %c0_4 = arith.constant 0 : index
    %c0_5 = arith.constant 0 : index
    %c0_6 = arith.constant 0 : index
    %c0_7 = arith.constant 0 : index
    %4 = vector.load %arg3[%c0_4, %c0_5, %c0_6, %c0_7] : memref<1x1x16x3xbf16, #tpu.memory_space<vmem>>, vector<1x1x16x3xbf16>
    %5 = vector.shape_cast %4 : vector<1x1x16x3xbf16> to vector<1x16x3xbf16>
    %c0_8 = arith.constant 0 : index
    %c0_9 = arith.constant 0 : index
    %c0_10 = arith.constant 0 : index
    %c0_11 = arith.constant 0 : index
    %6 = vector.load %arg4[%c0_8, %c0_9, %c0_10, %c0_11] : memref<1x1x16x3xbf16, #tpu.memory_space<vmem>>, vector<1x1x16x3xbf16>
    %7 = vector.shape_cast %6 : vector<1x1x16x3xbf16> to vector<1x16x3xbf16>
    %cst = arith.constant 0.000000e+00 : bf16
    %8 = vector.broadcast %cst : bf16 to vector<1x16x3xbf16>
    %9 = arith.select %0, %8, %5 : vector<1x16x3xbf16>
    %cst_12 = arith.constant 0.000000e+00 : bf16
    %10 = vector.broadcast %cst_12 : bf16 to vector<1x16x3xbf16>
    %11 = arith.select %1, %10, %7 : vector<1x16x3xbf16>
    %12 = tpu.concatenate %9, %3, %11 in 0 : vector<1x16x3xbf16>, vector<16x16x3xbf16>, vector<1x16x3xbf16> -> vector<18x16x3xbf16>
    %cst_13 = arith.constant 0.000000e+00 : bf16
    %13 = vector.broadcast %cst_13 : bf16 to vector<18x1x3xbf16>
    %14 = vector.extract_strided_slice %12 {offsets = [0, 0, 0], sizes = [18, 15, 3], strides = [1, 1, 1]} : vector<18x16x3xbf16> to vector<18x15x3xbf16>
    %15 = tpu.concatenate %13, %14 in 1 : vector<18x1x3xbf16>, vector<18x15x3xbf16> -> vector<18x16x3xbf16>
    %16 = vector.extract_strided_slice %12 {offsets = [0, 1, 0], sizes = [18, 15, 3], strides = [1, 1, 1]} : vector<18x16x3xbf16> to vector<18x15x3xbf16>
    %17 = tpu.concatenate %16, %13 in 1 : vector<18x15x3xbf16>, vector<18x1x3xbf16> -> vector<18x16x3xbf16>
    %18 = tpu.concatenate %15, %12, %17 in 2 : vector<18x16x3xbf16>, vector<18x16x3xbf16>, vector<18x16x3xbf16> -> vector<18x16x9xbf16>
    %cst_14 = arith.constant 0.000000e+00 : f32
    %19 = vector.broadcast %cst_14 : f32 to vector<256x32xf32>
    %20 = vector.extract_strided_slice %18 {offsets = [0, 0, 0], sizes = [16, 16, 9], strides = [1, 1, 1]} : vector<18x16x9xbf16> to vector<16x16x9xbf16>
    %21 = vector.shape_cast %20 : vector<16x16x9xbf16> to vector<256x9xbf16>
    %c0_15 = arith.constant 0 : index
    %c0_16 = arith.constant 0 : index
    %c0_17 = arith.constant 0 : index
    %22 = vector.load %arg5[%c0_15, %c0_16, %c0_17] : memref<3x9x32xbf16, #tpu.memory_space<vmem>>, vector<1x9x32xbf16>
    %23 = vector.shape_cast %22 : vector<1x9x32xbf16> to vector<9x32xbf16>
    %cst_18 = arith.constant dense<0.000000e+00> : vector<256x32xf32>
    %24 = tpu.matmul %21, %23, %cst_18 {dimension_numbers = #tpu.dot_dimension_numbers<[1], [0], [0], [1], [0, 0, 1, 1], [], []>} : vector<256x9xbf16>, vector<9x32xbf16>, vector<256x32xf32> -> vector<256x32xf32>
    %25 = arith.addf %19, %24 : vector<256x32xf32>
    %26 = vector.extract_strided_slice %18 {offsets = [1, 0, 0], sizes = [16, 16, 9], strides = [1, 1, 1]} : vector<18x16x9xbf16> to vector<16x16x9xbf16>
    %27 = vector.shape_cast %26 : vector<16x16x9xbf16> to vector<256x9xbf16>
    %c1 = arith.constant 1 : index
    %c0_19 = arith.constant 0 : index
    %c0_20 = arith.constant 0 : index
    %28 = vector.load %arg5[%c1, %c0_19, %c0_20] : memref<3x9x32xbf16, #tpu.memory_space<vmem>>, vector<1x9x32xbf16>
    %29 = vector.shape_cast %28 : vector<1x9x32xbf16> to vector<9x32xbf16>
    %cst_21 = arith.constant dense<0.000000e+00> : vector<256x32xf32>
    %30 = tpu.matmul %27, %29, %cst_21 {dimension_numbers = #tpu.dot_dimension_numbers<[1], [0], [0], [1], [0, 0, 1, 1], [], []>} : vector<256x9xbf16>, vector<9x32xbf16>, vector<256x32xf32> -> vector<256x32xf32>
    %31 = arith.addf %25, %30 : vector<256x32xf32>
    %32 = vector.extract_strided_slice %18 {offsets = [2, 0, 0], sizes = [16, 16, 9], strides = [1, 1, 1]} : vector<18x16x9xbf16> to vector<16x16x9xbf16>
    %33 = vector.shape_cast %32 : vector<16x16x9xbf16> to vector<256x9xbf16>
    %c2 = arith.constant 2 : index
    %c0_22 = arith.constant 0 : index
    %c0_23 = arith.constant 0 : index
    %34 = vector.load %arg5[%c2, %c0_22, %c0_23] : memref<3x9x32xbf16, #tpu.memory_space<vmem>>, vector<1x9x32xbf16>
    %35 = vector.shape_cast %34 : vector<1x9x32xbf16> to vector<9x32xbf16>
    %cst_24 = arith.constant dense<0.000000e+00> : vector<256x32xf32>
    %36 = tpu.matmul %33, %35, %cst_24 {dimension_numbers = #tpu.dot_dimension_numbers<[1], [0], [0], [1], [0, 0, 1, 1], [], []>} : vector<256x9xbf16>, vector<9x32xbf16>, vector<256x32xf32> -> vector<256x32xf32>
    %37 = arith.addf %31, %36 : vector<256x32xf32>
    %c0_25 = arith.constant 0 : index
    %c0_26 = arith.constant 0 : index
    %38 = vector.load %arg6[%c0_25, %c0_26] : memref<1x32xf32, #tpu.memory_space<vmem>>, vector<1x32xf32>
    %39 = vector.broadcast %38 : vector<1x32xf32> to vector<256x32xf32>
    %40 = arith.addf %37, %39 : vector<256x32xf32>
    %41 = vector.shape_cast %40 : vector<256x32xf32> to vector<16x16x32xf32>
    %42 = arith.truncf %41 : vector<16x16x32xf32> to vector<16x16x32xbf16>
    %c0_27 = arith.constant 0 : index
    %c0_28 = arith.constant 0 : index
    %c0_29 = arith.constant 0 : index
    %c0_30 = arith.constant 0 : index
    %43 = vector.load %arg7[%c0_27, %c0_28, %c0_29, %c0_30] : memref<1x16x16x32xbf16, #tpu.memory_space<vmem>>, vector<1x16x16x32xbf16>
    %44 = vector.shape_cast %43 : vector<1x16x16x32xbf16> to vector<16x16x32xbf16>
    %45 = vector.shape_cast %42 : vector<16x16x32xbf16> to vector<1x16x16x32xbf16>
    tpu.vector_store %arg7[%c0_27, %c0_28, %c0_29, %c0_30], %45 {strides = array<i32>} : memref<1x16x16x32xbf16, #tpu.memory_space<vmem>>, vector<1x16x16x32xbf16>,
    return
  }
  func.func @transform_0(%arg0: i32, %arg1: i32) -> (i32, i32, i32, i32) {
    %c0_i32 = arith.constant 0 : i32
    %c0_i32_0 = arith.constant 0 : i32
    %c0_i32_1 = arith.constant 0 : i32
    return %arg0, %arg1, %c0_i32, %c0_i32_0 : i32, i32, i32, i32
  }
  func.func @transform_1(%arg0: i32, %arg1: i32) -> (i32, i32, i32, i32) {
    %c16_i32 = arith.constant 16 : i32
    %0 = arith.muli %arg1, %c16_i32 : i32
    %c1_i32 = arith.constant 1 : i32
    %1 = arith.subi %0, %c1_i32 : i32
    %c0_i32 = arith.constant 0 : i32
    %2 = arith.maxsi %1, %c0_i32 : i32
    %c0_i32_0 = arith.constant 0 : i32
    %c0_i32_1 = arith.constant 0 : i32
    %c0_i32_2 = arith.constant 0 : i32
    return %arg0, %2, %c0_i32_0, %c0_i32_1 : i32, i32, i32, i32
  }
  func.func @transform_2(%arg0: i32, %arg1: i32) -> (i32, i32, i32, i32) {
    %c1_i32 = arith.constant 1 : i32
    %0 = arith.addi %arg1, %c1_i32 : i32
    %c16_i32 = arith.constant 16 : i32
    %1 = arith.muli %0, %c16_i32 : i32
    %c15_i32 = arith.constant 15 : i32
    %2 = arith.minsi %1, %c15_i32 : i32
    %c0_i32 = arith.constant 0 : i32
    %c0_i32_0 = arith.constant 0 : i32
    %c0_i32_1 = arith.constant 0 : i32
    return %arg0, %2, %c0_i32, %c0_i32_0 : i32, i32, i32, i32
  }
  func.func @transform_3(%arg0: i32, %arg1: i32) -> (i32, i32, i32) {
    %c0_i32 = arith.constant 0 : i32
    %c0_i32_0 = arith.constant 0 : i32
    %c0_i32_1 = arith.constant 0 : i32
    %c0_i32_2 = arith.constant 0 : i32
    return %c0_i32, %c0_i32_0, %c0_i32_1 : i32, i32, i32
  }
  func.func @transform_4(%arg0: i32, %arg1: i32) -> (i32, i32) {
    %c0_i32 = arith.constant 0 : i32
    %c0_i32_0 = arith.constant 0 : i32
    %c0_i32_1 = arith.constant 0 : i32
    return %c0_i32, %c0_i32_0 : i32, i32
  }
  func.func @transform_5(%arg0: i32, %arg1: i32) -> (i32, i32, i32, i32) {
    %c0_i32 = arith.constant 0 : i32
    %c0_i32_0 = arith.constant 0 : i32
    %c0_i32_1 = arith.constant 0 : i32
    return %arg0, %arg1, %c0_i32, %c0_i32_0 : i32, i32, i32, i32
  }
}

</mosaic_0001>

<bundles_post_ra>
// kernel: tpu_custom_call.1
= control target key start
LH: loop header
LB: loop body
LE: loop exit
PB: predicated region body
PF: predicated region fallthrough
CT: control target
= control target key end

     0   :  { %10 = vsyncpa [#allocation3], 0  ;;  %s3095_s0 = inlined_call_operand.vmem [shape: bf16[2,16,16,3], index: 0, kind: input, shape index: {}]   ;;  %s3096_s1 = inlined_call_operand.vmem [shape: bf16[2,16,16,3], index: 1, kind: input, shape index: {}]   ;;  %s3097_s2 = inlined_call_operand.vmem [shape: bf16[2,16,16,3], index: 2, kind: input, shape index: {}]   ;;  %s3098_s3 = inlined_call_operand.vmem [shape: bf16[3,9,32], index: 3, kind: input, shape index: {}]   ;;  %s3099_s4 = inlined_call_operand.vmem [shape: f32[1,32], index: 4, kind: input, shape index: {}]   ;;  %s3100_s5 = inlined_call_operand.hbm [shape: bf16[2,16,16,32], index: 5, kind: output, shape index: {}]  }
   0x1   :  { %12 = vsyncpa [#allocation3 + $0x1], 0  ;;  %s2377_s18 = smov 0   ;;  %s2379_s19 = smov 0  }
   0x2   :  { %s2381_s20 = smov 0   ;;  %s2383_s1 = smov 0  }
   0x3   :  { %s2385_s2 = smov 0   ;;  %s2387_s21 = smov 0  }
   0x4 LB: > { %s1867_s22 = sadd.s32 4294967295, %s2338_s21   ;;  %s1868_s23 = sadd.s32 4294967294, %s2338_s21   ;;  %s2338_s21 = sphi %s2387_s21, %s18_s21   ;;  %s2334_s2 = sphi %s2385_s2, %s3111_s2   ;;  %s2330_s1 = sphi %s2383_s1, %s3110_s1   ;;  %s2326_s20 = sphi %s2381_s20, %s3109_s20   ;;  %s2322_s19 = sphi %s2379_s19, %s3108_s19   ;;  %s2318_s18 = sphi %s2377_s18, %s3107_s18  }
   0x5   : > { %s30_s24 = sadd.s32 1, %s2334_s2  ;;  %s181_s25 = sadd.s32 1, %s2326_s20 }
   0x6   : > { %p32_p0 = scmp.ge.s32.totalorder %s30_s24, 2  ;;  %p191_p1 = scmp.ne.s32.totalorder %s2326_s20, %s2322_s19 }
   0x7   : > { %p192_p2 = scmp.eq.s32.totalorder %s1867_s22, 1  ;;  %p197_p3 = scmp.ne.s32.totalorder %s2322_s19, %s2318_s18 }
   0x8   : > { %s3113_s24 = smov (%p32_p0, %s30_s24), 0  ;;  %p198_p5 = scmp.eq.s32.totalorder %s1868_s23, 1 }
   0x9   : > { %p2417_p4 = por %p192_p2, %p191_p1  ;;  %s176_s27 = ssub.s32 %s2334_s2, %s3113_s24 }
   0xa   : > { %p1871_p6 = scmp.ge.s32.totalorder %s2338_s21, 1  ;;  %p179_p7 = scmp.eq.s32.totalorder %s176_s27, 0 }
   0xb   : > { %p2424_p8 = por %p198_p5, %p197_p3  ;;  %p276_p9 = scmp.lt.s32.totalorder %s2338_s21, 3 }
   0xc   : > { %s2430_s29 = scalar_select %p179_p7, %s2326_s20, %s181_s25  }
   0xd   : > { %p277_p10 = pnand %p1871_p6, %p276_p9 }
   0xe   : > { %p336_p11 = scmp.lt.s32.totalorder (!%p277_p10), %s2330_s1, 1  ;;  %s2341_s12 = smov (!%p277_p10), 3  }
   0xf   : > { %280 = sbr.rel (%p277_p10) target bundleno = 485 (0x1e5), region = 40  ;;  %s2342_s13 = smov (!%p277_p10), 6  }
  0x10   : > { %s332_s22 = sand.u32 (!%p277_p10), 1, %s2322_s19   ;;  %s2026_s6 = sshll.u32 (!%p277_p10), %s2330_s1, 11 }
  0x11   : > { %s1872_s27 = sshll.u32 (!%p277_p10), %s332_s22, 7  ;;  %s3040_s10 = scalar_lea.hbm (!%p277_p10), %s3100_s5, %s2026_s6 }
  0x14   : > { %s337_s30 = scalar_select %p336_p11, %s2330_s1, 1  ;;  %vm981_vm0 = vcmask 1043456   ;;  %v2259_v0 = vld [vmem:[%s3098_s3 + $0x8] sm:$0x1f]   ;;  %vm982_vm1 = vcmask 1044480   ;;  %v2340_v1 = vmov 65535  }
  0x15   : > { %v983_v2 = vsel %vm981_vm0, 4294967295, %v2340_v1  ;;  %vm736_vm2 = vsmask.f32 7424  ;;  %vm735_vm3 = vcmask 1047552   ;;  %vm660_vm5 = vcmask 1040384   ;;  %s3050_s1 = scalar_lea.sflag [#allocation3], %s332_s22 }
  0x16   : > { %s1990_s8 = sshll.u32 %s337_s30, 7  ;;  %v2442_v3 = vsel %vm982_vm1, %v983_v2, 0  ;;  %vm2475_vm4 = vmand %vm735_vm3, %vm736_vm2  ;;  %vm661_vm6 = vsmask.f32 256  ;;  %vm846_vm8 = vcmask 23552   ;;  %vm901_vm9 = vcmask 48128  }
  0x17   : > { %s2440_s11 = scalar_lea.vmem %s3095_s0, %s1990_s8  ;;  %v986_v5 = vand.u32 %v2259_v0, %v2442_v3  ;;  %vm2671_vm7 = vmand %vm660_vm5, %vm661_vm6  ;;  %vm948_vm10 = vcmask 72704   ;;  %vm1693_vm11 = vcmask 257024   ;;  %s2919_s30 = scalar_lea.vmem [#allocation2], %s1872_s27 }
  0x18   : > { %v2243_v4 = vld [vmem:[%s2440_s11 + $0x40] sm:$0xff]   ;;  %v2451_v7 = vld [vmem:[%s2440_s11 + $0x48] sm:$0xff]   ;;  %v2463_v13 = vld [vmem:[%s2440_s11 + $0x50] sm:$0xff]   ;;  %s1743_s7 = sshll.u32 %s2919_s30, 4  ;;  %s3042_s7 = int_to_ptr.vmem [resolvable:$true] %s1743_s7 }
  0x19   : > { %v2447_v6 = vld [vmem:[%s2440_s11] sm:$0xff]   ;;  %774 = vrot.lane.b32.xlu0 %v2243_v4, %s2341_s12  ;;  %2180 = vmatprep.subr.bf16.mxu1 %v986_v5  ;;  %v2456_v8 = vld [vmem:[%s2440_s11 + $0x8] sm:$0xff]   ;;  %v583_v9 = vshll.u32 %v2243_v4, 16  ;;  %v580_v10 = vshrl.u32 %v2243_v4, 16  ;;  %v587_v11 = vshrl.u32 %v2451_v7, 16  ;;  %v590_v12 = vshll.u32 %v2451_v7, 16 }
  0x1a   : > { %758 = vrot.lane.b32.xlu1 %v2447_v6, %s2341_s12  ;;  %2181 = vmatpush3.bf16.msra.mxu1 %v986_v5  ;;  %v2466_v14 = vld [vmem:[%s2440_s11 + $0x58] sm:$0xff]   ;;  %v534_v17 = vshll.u32 %v2456_v8, 16  ;;  %v524_v18 = vshrl.u32 %v2447_v6, 16  ;;  %v527_v19 = vshll.u32 %v2447_v6, 16  ;;  %v531_v22 = vshrl.u32 %v2456_v8, 16  ;;  %v2493_v31 = vld [vmem:[%s2440_s11 + $0x10] sm:$0xff]  }
  0x1b   : > { %2078 = vmatprep.subr.bf16.mxu0 %v986_v5  ;;  %v699_v15 = vrot.slane %v583_v9, 1  ;;  %v701_v16 = vrot.slane %v590_v12, 1  ;;  %v597_v23 = vshll.u32 %v2463_v13, 16  ;;  %v594_v27 = vshrl.u32 %v2463_v13, 16  ;;  %v2496_v32 = vld [vmem:[%s2440_s11 + $0x18] sm:$0xff]   ;;  %v2513_v45 = vld [vmem:[%s2440_s11 + $0x60] sm:$0xff]  }
  0x1c   : > { %2079 = vmatpush3.bf16.msra.mxu0 %v986_v5  ;;  %v685_v25 = vrot.slane %v534_v17, 1  ;;  %v683_v26 = vrot.slane %v527_v19, 1  ;;  %v604_v33 = vshll.u32 %v2466_v14, 16  ;;  %v582_v34 = vrot.slane %v580_v10, 7  ;;  %v2526_v54 = vld [vmem:[%s2440_s11 + $0x68] sm:$0xff]   ;;  %v2541_v5 = vld [vmem:[%s2440_s11 + $0x20] sm:$0xff]  }
  0x1d   : > { %776 = vrot.lane.b32.xlu0 %v2451_v7, %s2341_s12  ;;  %v700_v21 = vor.u32 %v699_v15, %v580_v10  ;;  %v702_v24 = vor.u32 %v701_v16, %v587_v11  ;;  %v703_v28 = vrot.slane %v597_v23, 1  ;;  %v526_v37 = vrot.slane %v524_v18, 7  ;;  %v2544_v6 = vld [vmem:[%s2440_s11 + $0x28] sm:$0xff]  }
  0x1e   : > { %760 = vrot.lane.b32.xlu1 %v2456_v8, %s2341_s12  ;;  %v684_v30 = vor.u32 %v683_v26, %v524_v18  ;;  %v686_v36 = vor.u32 %v685_v25, %v531_v22  ;;  %v601_v39 = vshrl.u32 %v2466_v14, 16  ;;  %v705_v41 = vrot.slane %v604_v33, 1 }
  0x1f   : > { %v748_v29 = vsel %vm2475_vm4, %v702_v24, 0  ;;  %v747_v35 = vsel %vm2475_vm4, %v700_v21, 0  ;;  %v704_v38 = vor.u32 %v703_v28, %v594_v27  ;;  %v548_v42 = vshll.u32 %v2496_v32, 16 }
  0x20   : > { %v739_v40 = vsel %vm2475_vm4, %v684_v30, 0  ;;  %v541_v43 = vshll.u32 %v2493_v31, 16  ;;  %v740_v44 = vsel %vm2475_vm4, %v686_v36, 0  ;;  %v2515_v46 = vor.u32 %v583_v9, %v582_v34 }
  0x21   : > { %778 = vrot.lane.b32.xlu0 %v2463_v13, %s2341_s12  ;;  %v589_v47 = vrot.slane %v587_v11, 7  ;;  %v545_v48 = vshrl.u32 %v2496_v32, 16  ;;  %v538_v49 = vshrl.u32 %v2493_v31, 16  ;;  %v749_v50 = vsel %vm2475_vm4, %v704_v38, 0  ;;  %v2549_v11 = vld [vmem:[%s2440_s11 + $0x70] sm:$0xff]  }
  0x22   : > { %780 = vrot.lane.b32.xlu1 %v2466_v14, %s2341_s12  ;;  %v706_v51 = vor.u32 %v705_v41, %v601_v39  ;;  %v689_v52 = vrot.slane %v548_v42, 1  ;;  %v687_v53 = vrot.slane %v541_v43, 1  ;;  %v611_v55 = vshll.u32 %v2513_v45, 16  ;;  %v2261_v38 = vld [vmem:[%s3098_s3 + $0x10] sm:$0x1f]  }
  0x23   : > { %v2529_v56 = vor.u32 %v527_v19, %v526_v37  ;;  %v533_v57 = vrot.slane %v531_v22, 7  ;;  %v2536_v61 = vor.u32 %v590_v12, %v589_v47  ;;  %v596_v62 = vrot.slane %v594_v27, 7  ;;  %v2560_v19 = vld [vmem:[%s2440_s11 + $0x78] sm:$0xff]   ;;  %v2260_v37 = vld [vmem:[%s3098_s3] sm:$0x1f]  }
  0x24   : > { %v750_v58 = vsel %vm2475_vm4, %v706_v51, 0  ;;  %v690_v59 = vor.u32 %v689_v52, %v545_v48  ;;  %v688_v60 = vor.u32 %v687_v53, %v538_v49  ;;  %v608_v63 = vshrl.u32 %v2513_v45, 16 }
  0x25   : > { %830 = vrot.lane.b32.xlu0 %v748_v29, %s2342_s13  ;;  %v707_v0 = vrot.slane %v611_v55, 1  ;;  %v618_v1 = vshll.u32 %v2526_v54, 16  ;;  %v603_v2 = vrot.slane %v601_v39, 7  ;;  %v547_v4 = vrot.slane %v545_v48, 7  ;;  %v2565_v29 = vld [vmem:[%s2440_s11 + $0x30] sm:$0xff]  }
  0x26   : > { %828 = vrot.lane.b32.xlu1 %v747_v35, %s2342_s13  ;;  %v540_v7 = vrot.slane %v538_v49, 7  ;;  %v610_v9 = vrot.slane %v608_v63, 7  ;;  %v615_v10 = vshrl.u32 %v2526_v54, 16  ;;  %v742_v12 = vsel %vm2475_vm4, %v690_v59, 0 }
  0x27   : > { %v741_v15 = vsel %vm2475_vm4, %v688_v60, 0  ;;  %v559_v16 = vshrl.u32 %v2544_v6, 16  ;;  %v552_v18 = vshrl.u32 %v2541_v5, 16  ;;  %v708_v21 = vor.u32 %v707_v0, %v608_v63 }
  0x28   : > { %v617_v22 = vrot.slane %v615_v10, 7  ;;  %v709_v24 = vrot.slane %v618_v1, 1  ;;  %v622_v25 = vshrl.u32 %v2549_v11, 16  ;;  %v555_v28 = vshll.u32 %v2541_v5, 16 }
  0x29   : > { %812 = vrot.lane.b32.xlu0 %v739_v40, %s2342_s13  ;;  %v561_v26 = vrot.slane %v559_v16, 7  ;;  %v554_v27 = vrot.slane %v552_v18, 7  ;;  %v629_v30 = vshrl.u32 %v2560_v19, 16  ;;  %v2571_v34 = vor.u32 %v534_v17, %v533_v57 }
  0x2a   : > { %814 = vrot.lane.b32.xlu1 %v740_v44, %s2342_s13  ;;  %v2575_v35 = vor.u32 %v597_v23, %v596_v62  ;;  %v2579_v36 = vor.u32 %v604_v33, %v603_v2  ;;  %v566_v13 = vshrl.u32 %v2565_v29, 16  ;;  %v2589_v17 = vor.u32 %v541_v43, %v540_v7 }
  0x2b   : > { %v631_v8 = vrot.slane %v629_v30, 7  ;;  %v2593_v14 = vor.u32 %v548_v42, %v547_v4  ;;  %v751_v23 = vsel %vm2475_vm4, %v708_v21, 0  ;;  %v562_v33 = vshll.u32 %v2544_v6, 16 }
  0x2c   : > { %v625_v39 = vshll.u32 %v2549_v11, 16  ;;  %v632_v40 = vshll.u32 %v2560_v19, 16  ;;  %v568_v41 = vrot.slane %v566_v13, 7  ;;  %v2600_v44 = vor.u32 %v618_v1, %v617_v22 }
  0x2d   : > { %832 = vrot.lane.b32.xlu0 %v749_v50, %s2342_s13  ;;  %v2602_v47 = vor.u32 %v611_v55, %v610_v9  ;;  %v2608_v42 = vand.u32 %v2260_v37, %v2442_v3  ;;  %v2610_v43 = vor.u32 %v555_v28, %v554_v27  ;;  %v2613_v48 = vand.u32 %v2261_v38, %v2442_v3 }
  0x2e   : > { %762 = vrot.lane.b32.xlu1 %v2493_v31, %s2341_s12  ;;  %v624_v31 = vrot.slane %v622_v25, 7  ;;  %v2615_v49 = vor.u32 %v562_v33, %v561_v26  ;;  %v710_v50 = vor.u32 %v709_v24, %v615_v10  ;;  %v691_v51 = vrot.slane %v555_v28, 1 }
  0x2f   : > { %v2619_v52 = vor.u32 %v632_v40, %v631_v8  ;;  %v569_v57 = vshll.u32 %v2565_v29, 16  ;;  %2112 = vmatprep.subr.bf16.mxu1 %v2608_v42  ;;  %2146 = vmatprep.subr.bf16.mxu0 %v2613_v48  ;;  %v711_v1 = vrot.slane %v625_v39, 1  ;;  %v2343_v2 = vmov 0  }
  0x30   : > { %v2621_v53 = vor.u32 %v625_v39, %v624_v31  ;;  %v692_v59 = vor.u32 %v691_v51, %v552_v18  ;;  %v1879_v4 = vcombine.low %v2343_v2, %v2343_v2  ;;  %v713_v10 = vrot.slane %v632_v40, 1 }
  0x31   : > { %834 = vrot.lane.b32.xlu0 %v750_v58, %s2342_s13  ;;  %v2627_v58 = vor.u32 %v569_v57, %v568_v41  ;;  %v712_v9 = vor.u32 %v711_v1, %v622_v25  ;;  %v695_v18 = vrot.slane %v569_v57, 1  ;;  %v665_v51 = vsel %vm2671_vm7, 0, %v2571_v34 }
  0x32   : > { %764 = vrot.lane.b32.xlu1 %v2496_v32, %s2341_s12  ;;  %v2258_v32 = vld [vmem:[%s2440_s11 + $0x38] sm:$0xff]   ;;  %v743_v0 = vsel %vm2475_vm4, %v692_v59, 0  ;;  %v517_v7 = vshrl.u32 %v1879_v4, 16  ;;  %v674_v57 = vsel %vm2671_vm7, 0, %v2575_v35  ;;  %v675_v35 = vsel %vm2671_vm7, 0, %v2579_v36  ;;  %s2262_s11 = scalar_lea.vmem %s3042_s7, 2048 }
  0x33   : > { %v573_v55 = vshrl.u32 %v2258_v32, 16  ;;  %v576_v62 = vshll.u32 %v2258_v32, 16  ;;  %v666_v2 = vsel %vm2671_vm7, 0, %v2589_v17  ;;  %v667_v36 = vsel %vm2671_vm7, 0, %v2593_v14  ;;  %p2263_p12 = scmp.ne.s32.totalorder %s3042_s7, %s2262_s11 }
  0x35   : > { %816 = vrot.lane.b32.xlu0 %v741_v15, %s2342_s13  ;;  %v575_v3 = vrot.slane %v573_v55, 7  ;;  %v520_v15 = vshll.u32 %v1879_v4, 16  ;;  %v697_v22 = vrot.slane %v576_v62, 1  ;;  %p2264_p13 = pnand %p2263_p12, %p2417_p4 }
  0x36   : > { %818 = vrot.lane.b32.xlu1 %v742_v12, %s2342_s13  ;;  %v519_v12 = vrot.slane %v517_v7, 7 }
  0x37   : > { %v2634_v63 = vor.u32 %v576_v62, %v575_v3  ;;  %v698_v25 = vor.u32 %v697_v22, %v573_v55  ;;  %v681_v26 = vrot.slane %v520_v15, 1  ;;  %v677_v22 = vsel %vm2671_vm7, 0, %v2600_v44  ;;  %p2265_p0 = pneg %p2264_p13 }
  0x38   : > { %v2650_v21 = vor.u32 %v520_v15, %v519_v12  ;;  %v669_v44 = vsel %vm2671_vm7, 0, %v2615_v49  ;;  %v678_v49 = vsel %vm2671_vm7, 0, %v2621_v53 }
  0x39   : > { %782 = vrot.lane.b32.xlu0 %v2513_v45, %s2341_s12  ;;  %v693_v45 = vrot.slane %v562_v33, 1  ;;  %v746_v27 = vsel %vm2475_vm4, %v698_v25, 0  ;;  %v682_v28 = vor.u32 %v681_v26, %v517_v7  ;;  %v672_v33 = vsel %vm2671_vm7, 0, %v2515_v46 }
  0x3a   : > { %784 = vrot.lane.b32.xlu1 %v2526_v54, %s2341_s12  ;;  %v752_v54 = vsel %vm2475_vm4, %v710_v50, 0 }
  0x3b   : > { %v694_v60 = vor.u32 %v693_v45, %v559_v16  ;;  %v714_v16 = vor.u32 %v713_v10, %v629_v30 }
  0x3d   : > { %836 = vrot.lane.b32.xlu0 %v751_v23, %s2342_s13  ;;  %v754_v24 = vsel %vm2475_vm4, %v714_v16, 0 }
  0x3e   : > { %766 = vrot.lane.b32.xlu1 %v2541_v5, %s2341_s12  ;;  %v744_v5 = vsel %vm2475_vm4, %v694_v60, 0 }
  0x41   : > { %838 = vrot.lane.b32.xlu0 %v752_v54, %s2342_s13 }
  0x42   : > { %768 = vrot.lane.b32.xlu1 %v2544_v6, %s2341_s12  ;;  %v753_v6 = vsel %vm2475_vm4, %v712_v9, 0 }
  0x45   : > { %820 = vrot.lane.b32.xlu0 %v743_v0, %s2342_s13 }
  0x46   : > { %822 = vrot.lane.b32.xlu1 %v744_v5, %s2342_s13 }
  0x49   : > { %786 = vrot.lane.b32.xlu0 %v2549_v11, %s2341_s12  ;;  %v696_v11 = vor.u32 %v695_v18, %v566_v13  ;;  %v673_v13 = vsel %vm2671_vm7, 0, %v2536_v61 }
  0x4a   : > { %788 = vrot.lane.b32.xlu1 %v2560_v19, %s2341_s12 }
  0x4b   : > { %v745_v19 = vsel %vm2475_vm4, %v696_v11, 0 }
  0x4d   : > { %840 = vrot.lane.b32.xlu0 %v753_v6, %s2342_s13  ;;  %v676_v6 = vsel %vm2671_vm7, 0, %v2602_v47  ;;  %v668_v47 = vsel %vm2671_vm7, 0, %v2610_v43 }
  0x4e   : > { %770 = vrot.lane.b32.xlu1 %v2565_v29, %s2341_s12  ;;  %v738_v29 = vsel %vm2475_vm4, %v682_v28, 0 }
  0x51   : > { %842 = vrot.lane.b32.xlu0 %v754_v24, %s2342_s13 }
  0x52   : > { %772 = vrot.lane.b32.xlu1 %v2258_v32, %s2341_s12  ;;  %v664_v32 = vsel %vm2671_vm7, 0, %v2529_v56 }
  0x55   : > { %824 = vrot.lane.b32.xlu0 %v745_v19, %s2342_s13 }
  0x56   : > { %826 = vrot.lane.b32.xlu1 %v746_v27, %s2342_s13 }
  0x59   : > { %756 = vrot.lane.b32.xlu0 %v1879_v4, %s2341_s12 }
  0x5a   : > { %810 = vrot.lane.b32.xlu1 %v738_v29, %s2342_s13 }
  0x5d   : > { %790 = vrot.lane.b32.xlu0 %v1879_v4, %s2341_s12  ;;  %s2344_s12 = smov [#allocation2]  }
  0x5e   : > { %844 = vrot.lane.b32.xlu1 %v738_v29, %s2342_s13  ;;  %s2266_s13 = sshll.u32 %s2344_s12, 4  ;;  %s2267_s13 = int_to_ptr.vmem [resolvable:$false] %s2266_s13 }
  0x5f   : > { %s2268_s14 = scalar_lea.vmem %s2267_s13, 4096  ;;  %p2269_p1 = scmp.lt.s32.totalorder %s3042_s7, %s2267_s13 }
  0x60   : > { %p2270_p2 = scmp.lt.s32.totalorder %s2268_s14, %s2262_s11 }
  0x62   : > { %p2271_p3 = por %p2270_p2, %p2269_p1 }
  0x64   : > { %p2272_p5 = pnand %p2271_p3, %p2265_p0 }
  0x8b   : > { %v775_v30 = vpop.permute.xlu0 %774 }
  0x8c   : > { %v759_v31 = vpop.permute.xlu1 %758  ;;  %v876_v41 = vsel %vm846_vm8, %v672_v33, %v775_v30  ;;  %v679_v33 = vsel %vm2671_vm7, 0, %v2619_v52 }
  0x8d   : > { %v852_v45 = vsel %vm846_vm8, %v664_v32, %v759_v31 }
  0x8f   : > { %v777_v37 = vpop.permute.xlu0 %776 }
  0x90   : > { %v761_v38 = vpop.permute.xlu1 %760  ;;  %v879_v39 = vsel %vm846_vm8, %v673_v13, %v777_v37 }
  0x91   : > { %v855_v55 = vsel %vm846_vm8, %v665_v51, %v761_v38 }
  0x93   : > { %v779_v20 = vpop.permute.xlu0 %778 }
  0x94   : > { %v781_v23 = vpop.permute.xlu1 %780  ;;  %v882_v59 = vsel %vm846_vm8, %v674_v57, %v779_v20 }
  0x95   : > { %v885_v0 = vsel %vm846_vm8, %v675_v35, %v781_v23 }
  0x97   : > { %v831_v40 = vpop.permute.xlu0 %830 }
  0x98   : > { %v2687_v50 = vsel %vm901_vm9, %v879_v39, %v831_v40  ;;  %v829_v61 = vpop.permute.xlu1 %828 }
  0x99   : > { %v2693_v46 = vsel %vm901_vm9, %v876_v41, %v829_v61  ;;  %v670_v61 = vsel %vm2671_vm7, 0, %v2627_v58  ;;  %v663_v58 = vsel %vm2671_vm7, 0, %v2650_v21 }
  0x9a   : > { %2096 = vmatprep.mubr.msk.bf16.mxu1 %vm948_vm10, %v2693_v46 }
  0x9b   : > { %2097 = vmatmul.mubr.msk.bf16.vlgmr.msra.gmra.mxu1 %vm948_vm10, %v2687_v50  ;;  %v813_v56 = vpop.permute.xlu0 %812 }
  0x9c   : > { %v815_v3 = vpop.permute.xlu1 %814  ;;  %v2705_v34 = vsel %vm901_vm9, %v852_v45, %v813_v56  ;;  %2113 = vmatpush3.bf16.msra.mxu1 %v2608_v42  ;;  %v671_v45 = vsel %vm2671_vm7, 0, %v2634_v63 }
  0x9d   : > { %v2709_v54 = vsel %vm901_vm9, %v855_v55, %v815_v3  ;;  %2080 = vmatprep.mubr.msk.bf16.mxu0 %vm948_vm10, %v2705_v34 }
  0x9e   : > { %2081 = vmatmul.mubr.msk.bf16.vlgmr.msra.gmra.mxu0 %vm948_vm10, %v2709_v54 }
  0x9f   : > { %v833_v60 = vpop.permute.xlu0 %832  ;;  %2147 = vmatpush3.bf16.msra.mxu0 %v2613_v48 }
  0xa0   : > { %v763_v62 = vpop.permute.xlu1 %762  ;;  %v2721_v42 = vsel %vm901_vm9, %v882_v59, %v833_v60 }
  0xa1   : > { %2100 = vmatprep.mubr.msk.bf16.mxu1 %vm948_vm10, %v2721_v42  ;;  %v858_v5 = vsel %vm846_vm8, %v666_v2, %v763_v62 }
  0xa3   : > { %v835_v1 = vpop.permute.xlu0 %834 }
  0xa4   : > { %v765_v4 = vpop.permute.xlu1 %764  ;;  %v2730_v48 = vsel %vm901_vm9, %v885_v0, %v835_v1 }
  0xa5   : > { %2101 = vmatmul.mubr.msk.bf16.gmra.mxu1 %vm948_vm10, %v2730_v48  ;;  %v861_v9 = vsel %vm846_vm8, %v667_v36, %v765_v4 }
  0xa7   : > { %v817_v7 = vpop.permute.xlu0 %816 }
  0xa8   : > { %v819_v10 = vpop.permute.xlu1 %818  ;;  %v2740_v12 = vsel %vm901_vm9, %v858_v5, %v817_v7 }
  0xa9   : > { %v2743_v17 = vsel %vm901_vm9, %v861_v9, %v819_v10  ;;  %2084 = vmatprep.mubr.msk.bf16.mxu0 %vm948_vm10, %v2740_v12 }
  0xaa   : > { %2085 = vmatmul.mubr.msk.bf16.gmra.mxu0 %vm948_vm10, %v2743_v17 }
  0xab   : > { %v783_v14 = vpop.permute.xlu0 %782 }
  0xac   : > { %v785_v15 = vpop.permute.xlu1 %784  ;;  %v888_v16 = vsel %vm846_vm8, %v676_v6, %v783_v14 }
  0xad   : > { %v891_v25 = vsel %vm846_vm8, %v677_v22, %v785_v15 }
  0xaf   : > { %v837_v18 = vpop.permute.xlu0 %836 }
  0xb0   : > { %v767_v24 = vpop.permute.xlu1 %766  ;;  %v2757_v11 = vsel %vm901_vm9, %v888_v16, %v837_v18 }
  0xb1   : > { %2104 = vmatprep.mubr.msk.bf16.mxu1 %vm948_vm10, %v2757_v11  ;;  %v864_v28 = vsel %vm846_vm8, %v668_v47, %v767_v24 }
  0xb3   : > { %v839_v26 = vpop.permute.xlu0 %838 }
  0xb4   : > { %v769_v19 = vpop.permute.xlu1 %768  ;;  %v2766_v27 = vsel %vm901_vm9, %v891_v25, %v839_v26 }
  0xb5   : > { %2105 = vmatmul.mubr.msk.bf16.gmra.mxu1 %vm948_vm10, %v2766_v27  ;;  %v867_v30 = vsel %vm846_vm8, %v669_v44, %v769_v19 }
  0xb7   : > { %v821_v29 = vpop.permute.xlu0 %820 }
  0xb8   : > { %v823_v31 = vpop.permute.xlu1 %822  ;;  %v913_v37 = vsel %vm901_vm9, %v864_v28, %v821_v29 }
  0xb9   : > { %v915_v43 = vsel %vm901_vm9, %v867_v30, %v823_v31  ;;  %2088 = vmatprep.mubr.msk.bf16.mxu0 %vm948_vm10, %v913_v37 }
  0xba   : > { %2089 = vmatmul.mubr.msk.bf16.gmra.mxu0 %vm948_vm10, %v915_v43 }
  0xbb   : > { %v787_v38 = vpop.permute.xlu0 %786 }
  0xbc   : > { %v789_v20 = vpop.permute.xlu1 %788  ;;  %v894_v13 = vsel %vm846_vm8, %v678_v49, %v787_v38  ;;  %v2913_v49 = vld [vmem:[%s3099_s4] ss:$0 sm:$0xff] }
  0xbd   : > { %v897_v41 = vsel %vm846_vm8, %v679_v33, %v789_v20 }
  0xbf   : > { %v841_v23 = vpop.permute.xlu0 %840 }
  0xc0   : > { %v771_v39 = vpop.permute.xlu1 %770  ;;  %v933_v40 = vsel %vm901_vm9, %v894_v13, %v841_v23 }
  0xc1   : > { %2108 = vmatprep.mubr.msk.bf16.mxu1 %vm948_vm10, %v933_v40  ;;  %v870_v52 = vsel %vm846_vm8, %v670_v61, %v771_v39 }
  0xc3   : > { %v843_v32 = vpop.permute.xlu0 %842 }
  0xc4   : > { %v773_v53 = vpop.permute.xlu1 %772  ;;  %v935_v51 = vsel %vm901_vm9, %v897_v41, %v843_v32 }
  0xc5   : > { %2109 = vmatmul.mubr.msk.bf16.gmra.mxu1 %vm948_vm10, %v935_v51  ;;  %v873_v55 = vsel %vm846_vm8, %v671_v45, %v773_v53 }
  0xc7   : > { %v825_v56 = vpop.permute.xlu0 %824 }
  0xc8   : > { %v827_v57 = vpop.permute.xlu1 %826  ;;  %v917_v3 = vsel %vm901_vm9, %v870_v52, %v825_v56 }
  0xc9   : > { %v919_v59 = vsel %vm901_vm9, %v873_v55, %v827_v57  ;;  %2092 = vmatprep.mubr.msk.bf16.mxu0 %vm948_vm10, %v917_v3 }
  0xca   : > { %2093 = vmatmul.mubr.msk.bf16.gmra.mxu0 %vm948_vm10, %v919_v59 }
  0xcb   : > { %v757_v63 = vpop.permute.xlu0 %756  ;;  %2148 = vmatprep.mubr.msk.bf16.mxu0 %vm948_vm10, %v2709_v54 }
  0xcc   : > { %v849_v60 = vsel %vm846_vm8, %v663_v58, %v757_v63  ;;  %v811_v35 = vpop.permute.xlu1 %810 }
  0xcd   : > { %v903_v62 = vsel %vm901_vm9, %v849_v60, %v811_v35 }
  0xce   : > { %2114 = vmatprep.mubr.msk.bf16.mxu1 %vm948_vm10, %v903_v62 }
  0xcf   : > { %2115 = vmatmul.mubr.msk.bf16.vlgmr.msra.gmra.mxu1 %vm948_vm10, %v2705_v34  ;;  %v791_v0 = vpop.permute.xlu0 %790 }
  0xd0   : > { %2118 = vmatprep.mubr.msk.bf16.mxu1 %vm948_vm10, %v2709_v54  ;;  %v900_v21 = vsel %vm846_vm8, %v663_v58, %v791_v0  ;;  %v845_v8 = vpop.permute.xlu1 %844 }
  0xd1   : > { %v937_v1 = vsel %vm901_vm9, %v900_v21, %v845_v8 }
  0xd2   : > { %2149 = vmatmul.mubr.msk.bf16.vlgmr.msra.gmra.mxu0 %vm948_vm10, %v2740_v12 }
  0xd3   : > { %2152 = vmatprep.mubr.msk.bf16.mxu0 %vm948_vm10, %v2743_v17 }
  0xd7   : > { %2119 = vmatmul.mubr.msk.bf16.gmra.mxu1 %vm948_vm10, %v2740_v12 }
  0xd8   : > { %2122 = vmatprep.mubr.msk.bf16.mxu1 %vm948_vm10, %v2743_v17 }
  0xda   : > { %2153 = vmatmul.mubr.msk.bf16.gmra.mxu0 %vm948_vm10, %v913_v37 }
  0xdb   : > { %2156 = vmatprep.mubr.msk.bf16.mxu0 %vm948_vm10, %v915_v43 }
  0xdf   : > { %2123 = vmatmul.mubr.msk.bf16.gmra.mxu1 %vm948_vm10, %v913_v37 }
  0xe0   : > { %2126 = vmatprep.mubr.msk.bf16.mxu1 %vm948_vm10, %v915_v43 }
  0xe2   : > { %2157 = vmatmul.mubr.msk.bf16.gmra.mxu0 %vm948_vm10, %v917_v3 }
  0xe3   : > { %2160 = vmatprep.mubr.msk.bf16.mxu0 %vm948_vm10, %v919_v59 }
  0xe7   : > { %2127 = vmatmul.mubr.msk.bf16.gmra.mxu1 %vm948_vm10, %v917_v3 }
  0xe8   : > { %2130 = vmatprep.mubr.msk.bf16.mxu1 %vm948_vm10, %v919_v59 }
  0xea   : > { %2161 = vmatmul.mubr.msk.bf16.gmra.mxu0 %vm948_vm10, %v2693_v46 }
  0xeb   : > { %2164 = vmatprep.mubr.msk.bf16.mxu0 %vm948_vm10, %v2687_v50 }
  0xef   : > { %2131 = vmatmul.mubr.msk.bf16.gmra.mxu1 %vm948_vm10, %v2693_v46 }
  0xf0   : > { %2134 = vmatprep.mubr.msk.bf16.mxu1 %vm948_vm10, %v2687_v50 }
  0xf2   : > { %2165 = vmatmul.mubr.msk.bf16.gmra.mxu0 %vm948_vm10, %v2721_v42 }
  0xf3   : > { %2168 = vmatprep.mubr.msk.bf16.mxu0 %vm948_vm10, %v2730_v48 }
  0xf7   : > { %2135 = vmatmul.mubr.msk.bf16.gmra.mxu1 %vm948_vm10, %v2721_v42 }
  0xf8   : > { %2138 = vmatprep.mubr.msk.bf16.mxu1 %vm948_vm10, %v2730_v48 }
  0xfa   : > { %2169 = vmatmul.mubr.msk.bf16.gmra.mxu0 %vm948_vm10, %v2757_v11 }
  0xfb   : > { %2172 = vmatprep.mubr.msk.bf16.mxu0 %vm948_vm10, %v2766_v27 }
  0xff   : > { %2139 = vmatmul.mubr.msk.bf16.gmra.mxu1 %vm948_vm10, %v2757_v11 }
 0x100   : > { %2142 = vmatprep.mubr.msk.bf16.mxu1 %vm948_vm10, %v2766_v27 }
 0x102   : > { %2173 = vmatmul.mubr.msk.bf16.gmra.mxu0 %vm948_vm10, %v933_v40 }
 0x103   : > { %2176 = vmatprep.mubr.msk.bf16.mxu0 %vm948_vm10, %v935_v51 }
 0x107   : > { %2143 = vmatmul.mubr.msk.bf16.gmra.mxu1 %vm948_vm10, %v933_v40 }
 0x10a   : > { %2177 = vmatmul.mubr.msk.bf16.gmra.mxu0 %vm948_vm10, %v937_v1 }
 0x15b   : > { %v2861_v50 = vpop.f32.mrf.mxu1 }
 0x15d   : > { %v2863_v46 = vpop.f32.mrf.mxu1 }
 0x15e   : > { %v2082_v34 = vpop.f32.mrf.mxu0 }
 0x15f   : > { %v2865_v54 = vpop.f32.mrf.mxu1 }
 0x160   : > { %v1022_v42 = vpop.f32.mrf.mxu0 }
 0x161   : > { %v2867_v2 = vpop.f32.mrf.mxu1 }
 0x162   : > { %v2083_v4 = vpop.f32.mrf.mxu0 }
 0x164   : > { %v1025_v36 = vpop.f32.mrf.mxu0 }
 0x165   : > { %v2869_v48 = vpop.f32.mrf.mxu1 }
 0x167   : > { %v2871_v5 = vpop.f32.mrf.mxu1 }
 0x169   : > { %v2873_v9 = vpop.f32.mrf.mxu1 }
 0x16a   : > { %v2086_v7 = vpop.f32.mrf.mxu0 }
 0x16b   : > { %v2875_v12 = vpop.f32.mrf.mxu1 }
 0x16c   : > { %v1038_v10 = vpop.f32.mrf.mxu0 }
 0x16e   : > { %v2087_v17 = vpop.f32.mrf.mxu0 }
 0x170   : > { %v1041_v15 = vpop.f32.mrf.mxu0 }
 0x175   : > { %v2877_v14 = vpop.f32.mrf.mxu1 }
 0x177   : > { %v2879_v6 = vpop.f32.mrf.mxu1 }
 0x179   : > { %v2883_v18 = vpop.f32.mrf.mxu1 }
 0x17a   : > { %v2881_v16 = vpop.f32.mrf.mxu0 }
 0x17b   : > { %v2887_v24 = vpop.f32.mrf.mxu1 }
 0x17c   : > { %v2885_v22 = vpop.f32.mrf.mxu0 }
 0x17e   : > { %v2889_v11 = vpop.f32.mrf.mxu0 }
 0x180   : > { %v2895_v47 = vpop.f32.mrf.mxu0 }
 0x185   : > { %v2891_v25 = vpop.f32.mrf.mxu1 }
 0x187   : > { %v2893_v26 = vpop.f32.mrf.mxu1 }
 0x189   : > { %v2897_v19 = vpop.f32.mrf.mxu1 }
 0x18a   : > { %v2899_v27 = vpop.f32.mrf.mxu0 }
 0x18b   : > { %v2903_v28 = vpop.f32.mrf.mxu1 }
 0x18c   : > { %v2901_v44 = vpop.f32.mrf.mxu0 }
 0x18e   : > { %v2905_v29 = vpop.f32.mrf.mxu0 }
 0x18f   : > { %v2116_v30 = vpop.f32.mrf.mxu1 }
 0x190   : > { %v1202_v31 = vadd.f32 %v2116_v30, %v2082_v34  ;;  %v2907_v37 = vpop.f32.mrf.mxu0 }
 0x191   : > { %v1193_v43 = vpop.f32.mrf.mxu1 }
 0x192   : > { %v1194_v38 = vadd.f32 %v1193_v43, %v1022_v42  ;;  %v2150_v20 = vpop.f32.mrf.mxu0 }
 0x193   : > { %v1496_v13 = vadd.f32 %v2150_v20, %v1202_v31  ;;  %v2117_v23 = vpop.f32.mrf.mxu1 }
 0x194   : > { %v1205_v33 = vadd.f32 %v2117_v23, %v2083_v4  ;;  %v1367_v39 = vpop.f32.mrf.mxu0 }
 0x195   : > { %v1535_v40 = vadd.f32 %v2913_v49, %v1496_v13  ;;  %v1494_v41 = vadd.f32 %v1367_v39, %v1194_v38  ;;  %v1196_v32 = vpop.f32.mrf.mxu1 }
 0x196   : > { %v1197_v61 = vadd.f32 %v1196_v32, %v1025_v36  ;;  %v2151_v53 = vpop.f32.mrf.mxu0 }
 0x197   : > { %v1996_v51 = vpack.c.bf16 %v1535_v40, %v1535_v40  ;;  %v1533_v45 = vadd.f32 %v2913_v49, %v1494_v41  ;;  %v1497_v52 = vadd.f32 %v2151_v53, %v1205_v33  ;;  %v2120_v56 = vpop.f32.mrf.mxu1 }
 0x198   : > { %v1218_v55 = vadd.f32 %v2120_v56, %v2086_v7  ;;  %v1370_v57 = vpop.f32.mrf.mxu0 }
 0x199   : > { %1696 = vst.msk [vmem:[%s2919_s30 + $0x8] sm:$0xf] %vm1693_vm11, %v1996_v51  ;;  %v1994_v3 = vpack.c.bf16 %v1533_v45, %v1533_v45  ;;  %v1536_v59 = vadd.f32 %v2913_v49, %v1497_v52  ;;  %v1495_v58 = vadd.f32 %v1370_v57, %v1197_v61  ;;  %v1209_v63 = vpop.f32.mrf.mxu1 }
 0x19a   : > { %v1210_v60 = vadd.f32 %v1209_v63, %v1038_v10  ;;  %v2154_v35 = vpop.f32.mrf.mxu0 }
 0x19b   : > { %1694 = vst.msk [vmem:[%s2919_s30] sm:$0xf] %vm1693_vm11, %v1994_v3  ;;  %v1997_v62 = vpack.c.bf16 %v1536_v59, %v1536_v59  ;;  %v1534_v0 = vadd.f32 %v2913_v49, %v1495_v58  ;;  %v1500_v21 = vadd.f32 %v2154_v35, %v1218_v55  ;;  %v2121_v8 = vpop.f32.mrf.mxu1 }
 0x19c   : > { %v1221_v1 = vadd.f32 %v2121_v8, %v2087_v17  ;;  %v1383_v34 = vpop.f32.mrf.mxu0 }
 0x19d   : > { %1697 = vst.msk [vmem:[%s2919_s30 + $0xc] sm:$0xf] %vm1693_vm11, %v1997_v62  ;;  %v1995_v42 = vpack.c.bf16 %v1534_v0, %v1534_v0  ;;  %v1539_v4 = vadd.f32 %v2913_v49, %v1500_v21  ;;  %v1498_v36 = vadd.f32 %v1383_v34, %v1210_v60  ;;  %v1212_v7 = vpop.f32.mrf.mxu1 }
 0x19e   : > { %v1213_v10 = vadd.f32 %v1212_v7, %v1041_v15  ;;  %v2155_v30 = vpop.f32.mrf.mxu0 }
 0x19f   : > { %1695 = vst.msk [vmem:[%s2919_s30 + $0x4] sm:$0xf] %vm1693_vm11, %v1995_v42  ;;  %v2000_v31 = vpack.c.bf16 %v1539_v4, %v1539_v4  ;;  %v1537_v43 = vadd.f32 %v2913_v49, %v1498_v36  ;;  %v1501_v38 = vadd.f32 %v2155_v30, %v1221_v1  ;;  %v2124_v20 = vpop.f32.mrf.mxu1 }
 0x1a0   : > { %v1234_v17 = vadd.f32 %v2124_v20, %v2881_v16  ;;  %v1386_v13 = vpop.f32.mrf.mxu0 }
 0x1a1   : > { %1700 = vst.msk [vmem:[%s2919_s30 + $0x18] sm:$0xf] %vm1693_vm11, %v2000_v31  ;;  %v1998_v23 = vpack.c.bf16 %v1537_v43, %v1537_v43  ;;  %v1540_v33 = vadd.f32 %v2913_v49, %v1501_v38  ;;  %v1499_v39 = vadd.f32 %v1386_v13, %v1213_v10  ;;  %v1225_v15 = vpop.f32.mrf.mxu1 }
 0x1a2   : > { %v1226_v40 = vadd.f32 %v1225_v15, %v2885_v22  ;;  %v2158_v41 = vpop.f32.mrf.mxu0 }
 0x1a3   : > { %1698 = vst.msk [vmem:[%s2919_s30 + $0x10] sm:$0xf] %vm1693_vm11, %v1998_v23  ;;  %v2001_v32 = vpack.c.bf16 %v1540_v33, %v1540_v33  ;;  %v1538_v61 = vadd.f32 %v2913_v49, %v1499_v39  ;;  %v1504_v53 = vadd.f32 %v2158_v41, %v1234_v17  ;;  %v2125_v16 = vpop.f32.mrf.mxu1 }
 0x1a4   : > { %v1237_v51 = vadd.f32 %v2125_v16, %v2889_v11  ;;  %v1399_v45 = vpop.f32.mrf.mxu0 }
 0x1a5   : > { %1701 = vst.msk [vmem:[%s2919_s30 + $0x1c] sm:$0xf] %vm1693_vm11, %v2001_v32  ;;  %v1999_v52 = vpack.c.bf16 %v1538_v61, %v1538_v61  ;;  %v1543_v56 = vadd.f32 %v2913_v49, %v1504_v53  ;;  %v1502_v55 = vadd.f32 %v1399_v45, %v1226_v40  ;;  %v1228_v22 = vpop.f32.mrf.mxu1 }
 0x1a6   : > { %v1229_v57 = vadd.f32 %v1228_v22, %v2895_v47  ;;  %v2159_v3 = vpop.f32.mrf.mxu0 }
 0x1a7   : > { %1699 = vst.msk [vmem:[%s2919_s30 + $0x14] sm:$0xf] %vm1693_vm11, %v1999_v52  ;;  %v2004_v59 = vpack.c.bf16 %v1543_v56, %v1543_v56  ;;  %v1541_v58 = vadd.f32 %v2913_v49, %v1502_v55  ;;  %v1505_v63 = vadd.f32 %v2159_v3, %v1237_v51  ;;  %v2128_v11 = vpop.f32.mrf.mxu1 }
 0x1a8   : > { %v1250_v60 = vadd.f32 %v2128_v11, %v2899_v27  ;;  %v1402_v35 = vpop.f32.mrf.mxu0 }
 0x1a9   : > { %1704 = vst.msk [vmem:[%s2919_s30 + $0x28] sm:$0xf] %vm1693_vm11, %v2004_v59  ;;  %v2002_v62 = vpack.c.bf16 %v1541_v58, %v1541_v58  ;;  %v1544_v0 = vadd.f32 %v2913_v49, %v1505_v63  ;;  %v1503_v21 = vadd.f32 %v1402_v35, %v1229_v57  ;;  %v1241_v47 = vpop.f32.mrf.mxu1 }
 0x1aa   : > { %v1242_v8 = vadd.f32 %v1241_v47, %v2901_v44  ;;  %v2162_v1 = vpop.f32.mrf.mxu0 }
 0x1ab   : > { %1702 = vst.msk [vmem:[%s2919_s30 + $0x20] sm:$0xf] %vm1693_vm11, %v2002_v62  ;;  %v2005_v34 = vpack.c.bf16 %v1544_v0, %v1544_v0  ;;  %v1542_v42 = vadd.f32 %v2913_v49, %v1503_v21  ;;  %v1508_v4 = vadd.f32 %v2162_v1, %v1250_v60  ;;  %v2129_v27 = vpop.f32.mrf.mxu1 }
 0x1ac   : > { %v1253_v36 = vadd.f32 %v2129_v27, %v2905_v29  ;;  %v1415_v7 = vpop.f32.mrf.mxu0 }
 0x1ad   : > { %1705 = vst.msk [vmem:[%s2919_s30 + $0x2c] sm:$0xf] %vm1693_vm11, %v2005_v34  ;;  %v2003_v10 = vpack.c.bf16 %v1542_v42, %v1542_v42  ;;  %v1547_v30 = vadd.f32 %v2913_v49, %v1508_v4  ;;  %v1506_v31 = vadd.f32 %v1415_v7, %v1242_v8  ;;  %v1244_v44 = vpop.f32.mrf.mxu1 }
 0x1ae   : > { %v1245_v43 = vadd.f32 %v1244_v44, %v2907_v37  ;;  %v2163_v38 = vpop.f32.mrf.mxu0 }
 0x1af   : > { %1703 = vst.msk [vmem:[%s2919_s30 + $0x24] sm:$0xf] %vm1693_vm11, %v2003_v10  ;;  %v2008_v20 = vpack.c.bf16 %v1547_v30, %v1547_v30  ;;  %v1545_v17 = vadd.f32 %v2913_v49, %v1506_v31  ;;  %v1509_v13 = vadd.f32 %v2163_v38, %v1253_v36  ;;  %v2132_v29 = vpop.f32.mrf.mxu1 }
 0x1b0   : > { %v1266_v23 = vadd.f32 %v2132_v29, %v2861_v50  ;;  %v1418_v33 = vpop.f32.mrf.mxu0 }
 0x1b1   : > { %1708 = vst.msk [vmem:[%s2919_s30 + $0x38] sm:$0xf] %vm1693_vm11, %v2008_v20  ;;  %v2006_v39 = vpack.c.bf16 %v1545_v17, %v1545_v17  ;;  %v1548_v15 = vadd.f32 %v2913_v49, %v1509_v13  ;;  %v1507_v40 = vadd.f32 %v1418_v33, %v1245_v43  ;;  %v1257_v37 = vpop.f32.mrf.mxu1 }
 0x1b2   : > { %v1258_v41 = vadd.f32 %v1257_v37, %v2863_v46  ;;  %v2166_v32 = vpop.f32.mrf.mxu0 }
 0x1b3   : > { %1706 = vst.msk [vmem:[%s2919_s30 + $0x30] sm:$0xf] %vm1693_vm11, %v2006_v39  ;;  %v2009_v61 = vpack.c.bf16 %v1548_v15, %v1548_v15  ;;  %v1546_v53 = vadd.f32 %v2913_v49, %v1507_v40  ;;  %v1512_v16 = vadd.f32 %v2166_v32, %v1266_v23  ;;  %v2133_v50 = vpop.f32.mrf.mxu1 }
 0x1b4   : > { %v1269_v51 = vadd.f32 %v2133_v50, %v2865_v54  ;;  %v1431_v45 = vpop.f32.mrf.mxu0 }
 0x1b5   : > { %1709 = vst.msk [vmem:[%s2919_s30 + $0x3c] sm:$0xf] %vm1693_vm11, %v2009_v61  ;;  %v2007_v52 = vpack.c.bf16 %v1546_v53, %v1546_v53  ;;  %v1551_v56 = vadd.f32 %v2913_v49, %v1512_v16  ;;  %v1510_v55 = vadd.f32 %v1431_v45, %v1258_v41  ;;  %v1260_v46 = vpop.f32.mrf.mxu1 }
 0x1b6   : > { %v1261_v22 = vadd.f32 %v1260_v46, %v2867_v2  ;;  %v2167_v57 = vpop.f32.mrf.mxu0 }
 0x1b7   : > { %1707 = vst.msk [vmem:[%s2919_s30 + $0x34] sm:$0xf] %vm1693_vm11, %v2007_v52  ;;  %v2012_v3 = vpack.c.bf16 %v1551_v56, %v1551_v56  ;;  %v1549_v59 = vadd.f32 %v2913_v49, %v1510_v55  ;;  %v1513_v58 = vadd.f32 %v2167_v57, %v1269_v51  ;;  %v2136_v54 = vpop.f32.mrf.mxu1 }
 0x1b8   : > { %v1282_v63 = vadd.f32 %v2136_v54, %v2869_v48  ;;  %v1434_v11 = vpop.f32.mrf.mxu0 }
 0x1b9   : > { %1712 = vst.msk [vmem:[%s2919_s30 + $0x48] sm:$0xf] %vm1693_vm11, %v2012_v3  ;;  %v2010_v60 = vpack.c.bf16 %v1549_v59, %v1549_v59  ;;  %v1552_v35 = vadd.f32 %v2913_v49, %v1513_v58  ;;  %v1511_v62 = vadd.f32 %v1434_v11, %v1261_v22  ;;  %v1273_v2 = vpop.f32.mrf.mxu1 }
 0x1ba   : > { %v1274_v0 = vadd.f32 %v1273_v2, %v2871_v5  ;;  %v2170_v21 = vpop.f32.mrf.mxu0 }
 0x1bb   : > { %1710 = vst.msk [vmem:[%s2919_s30 + $0x40] sm:$0xf] %vm1693_vm11, %v2010_v60  ;;  %v2013_v47 = vpack.c.bf16 %v1552_v35, %v1552_v35  ;;  %v1550_v8 = vadd.f32 %v2913_v49, %v1511_v62  ;;  %v1516_v1 = vadd.f32 %v2170_v21, %v1282_v63  ;;  %v2137_v48 = vpop.f32.mrf.mxu1 }
 0x1bc   : > { %v1285_v34 = vadd.f32 %v2137_v48, %v2873_v9  ;;  %v1447_v42 = vpop.f32.mrf.mxu0 }
 0x1bd   : > { %1713 = vst.msk [vmem:[%s2919_s30 + $0x4c] sm:$0xf] %vm1693_vm11, %v2013_v47  ;;  %v2011_v4 = vpack.c.bf16 %v1550_v8, %v1550_v8  ;;  %v1555_v27 = vadd.f32 %v2913_v49, %v1516_v1  ;;  %v1514_v36 = vadd.f32 %v1447_v42, %v1274_v0  ;;  %v1276_v5 = vpop.f32.mrf.mxu1 }
 0x1be   : > { %v1277_v7 = vadd.f32 %v1276_v5, %v2875_v12  ;;  %v2171_v10 = vpop.f32.mrf.mxu0 }
 0x1bf   : > { %1711 = vst.msk [vmem:[%s2919_s30 + $0x44] sm:$0xf] %vm1693_vm11, %v2011_v4  ;;  %v2016_v30 = vpack.c.bf16 %v1555_v27, %v1555_v27  ;;  %v1553_v31 = vadd.f32 %v2913_v49, %v1514_v36  ;;  %v1517_v44 = vadd.f32 %v2171_v10, %v1285_v34  ;;  %v2140_v9 = vpop.f32.mrf.mxu1 }
 0x1c0   : > { %v1298_v43 = vadd.f32 %v2140_v9, %v2877_v14  ;;  %v1450_v38 = vpop.f32.mrf.mxu0 }
 0x1c1   : > { %1716 = vst.msk [vmem:[%s2919_s30 + $0x58] sm:$0xf] %vm1693_vm11, %v2016_v30  ;;  %v2014_v20 = vpack.c.bf16 %v1553_v31, %v1553_v31  ;;  %v1556_v17 = vadd.f32 %v2913_v49, %v1517_v44  ;;  %v1515_v13 = vadd.f32 %v1450_v38, %v1277_v7  ;;  %v1289_v12 = vpop.f32.mrf.mxu1 }
 0x1c2   : > { %v1290_v29 = vadd.f32 %v1289_v12, %v2879_v6  ;;  %v2174_v23 = vpop.f32.mrf.mxu0 }
 0x1c3   : > { %1714 = vst.msk [vmem:[%s2919_s30 + $0x50] sm:$0xf] %vm1693_vm11, %v2014_v20  ;;  %v2017_v33 = vpack.c.bf16 %v1556_v17, %v1556_v17  ;;  %v1554_v39 = vadd.f32 %v2913_v49, %v1515_v13  ;;  %v1520_v15 = vadd.f32 %v2174_v23, %v1298_v43  ;;  %v2141_v14 = vpop.f32.mrf.mxu1 }
 0x1c4   : > { %v1301_v40 = vadd.f32 %v2141_v14, %v2883_v18  ;;  %v1463_v37 = vpop.f32.mrf.mxu0 }
 0x1c5   : > { %1717 = vst.msk [vmem:[%s2919_s30 + $0x5c] sm:$0xf] %vm1693_vm11, %v2017_v33  ;;  %v2015_v41 = vpack.c.bf16 %v1554_v39, %v1554_v39  ;;  %v1559_v32 = vadd.f32 %v2913_v49, %v1520_v15  ;;  %v1518_v61 = vadd.f32 %v1463_v37, %v1290_v29  ;;  %v1292_v6 = vpop.f32.mrf.mxu1 }
 0x1c6   : > { %v1293_v53 = vadd.f32 %v1292_v6, %v2887_v24  ;;  %v2175_v16 = vpop.f32.mrf.mxu0 }
 0x1c7   : > { %1715 = vst.msk [vmem:[%s2919_s30 + $0x54] sm:$0xf] %vm1693_vm11, %v2015_v41  ;;  %v2020_v50 = vpack.c.bf16 %v1559_v32, %v1559_v32  ;;  %v1557_v51 = vadd.f32 %v2913_v49, %v1518_v61  ;;  %v1521_v45 = vadd.f32 %v2175_v16, %v1301_v40  ;;  %v2144_v18 = vpop.f32.mrf.mxu1 }
 0x1c8   : > { %v1314_v52 = vadd.f32 %v2144_v18, %v2891_v25  ;;  %v1466_v56 = vpop.f32.mrf.mxu0 }
 0x1c9   : > { %1720 = vst.msk [vmem:[%s2919_s30 + $0x68] sm:$0xf] %vm1693_vm11, %v2020_v50  ;;  %v2018_v55 = vpack.c.bf16 %v1557_v51, %v1557_v51  ;;  %v1560_v46 = vadd.f32 %v2913_v49, %v1521_v45  ;;  %v1519_v22 = vadd.f32 %v1466_v56, %v1293_v53  ;;  %v1305_v24 = vpop.f32.mrf.mxu1 }
 0x1ca   : > { %v1306_v57 = vadd.f32 %v1305_v24, %v2893_v26  ;;  %v2178_v3 = vpop.f32.mrf.mxu0 }
 0x1cb   : > { %1718 = vst.msk [vmem:[%s2919_s30 + $0x60] sm:$0xf] %vm1693_vm11, %v2018_v55  ;;  %v2021_v59 = vpack.c.bf16 %v1560_v46, %v1560_v46  ;;  %v1558_v58 = vadd.f32 %v2913_v49, %v1519_v22  ;;  %v1524_v54 = vadd.f32 %v2178_v3, %v1314_v52  ;;  %v2145_v25 = vpop.f32.mrf.mxu1 }
 0x1cc   : > { %v1317_v63 = vadd.f32 %v2145_v25, %v2897_v19  ;;  %v1479_v11 = vpop.f32.mrf.mxu0 }
 0x1cd   : > { %1721 = vst.msk [vmem:[%s2919_s30 + $0x6c] sm:$0xf] %vm1693_vm11, %v2021_v59  ;;  %v2019_v60 = vpack.c.bf16 %v1558_v58, %v1558_v58  ;;  %v1563_v26 = vadd.f32 %v2913_v49, %v1524_v54  ;;  %v1522_v35 = vadd.f32 %v1479_v11, %v1306_v57  ;;  %v1308_v62 = vpop.f32.mrf.mxu1 }
 0x1ce   : > { %v1309_v2 = vadd.f32 %v1308_v62, %v2903_v28  ;;  %v2179_v0 = vpop.f32.mrf.mxu0 }
 0x1cf   : > { %1719 = vst.msk [vmem:[%s2919_s30 + $0x64] sm:$0xf] %vm1693_vm11, %v2019_v60  ;;  %v2024_v21 = vpack.c.bf16 %v1563_v26, %v1563_v26  ;;  %v1561_v19 = vadd.f32 %v2913_v49, %v1522_v35  ;;  %v1525_v47 = vadd.f32 %v2179_v0, %v1317_v63 }
 0x1d0   : > { %v1482_v8 = vpop.f32.mrf.mxu0 }
 0x1d1   : > { %1724 = vst.msk [vmem:[%s2919_s30 + $0x78] sm:$0xf] %vm1693_vm11, %v2024_v21  ;;  %v2022_v1 = vpack.c.bf16 %v1561_v19, %v1561_v19  ;;  %v1564_v48 = vadd.f32 %v2913_v49, %v1525_v47  ;;  %v1523_v34 = vadd.f32 %v1482_v8, %v1309_v2 }
 0x1d3   : > { %1722 = vst.msk [vmem:[%s2919_s30 + $0x70] sm:$0xf] %vm1693_vm11, %v2022_v1  ;;  %v2025_v28 = vpack.c.bf16 %v1564_v48, %v1564_v48  ;;  %v1562_v42 = vadd.f32 %v2913_v49, %v1523_v34 }
 0x1d5   : > { %1725 = vst.msk [vmem:[%s2919_s30 + $0x7c] sm:$0xf] %vm1693_vm11, %v2025_v28  ;;  %v2023_v4 = vpack.c.bf16 %v1562_v42, %v1562_v42 }
 0x1d7   : > { %1723 = vst.msk [vmem:[%s2919_s30 + $0x74] sm:$0xf] %vm1693_vm11, %v2023_v4 }
 0x1d8   : > { %2275 = shalt.err (!%p2272_p5)
}
 0x1d9   : > { %s2276_s15 = scalar_lea.hbm %s3040_s10, 2048  ;;  %s2280_s22 = scalar_lea.hbm %s3100_s5, 4096 }
 0x1da   : > { %p2277_p6 = scmp.ne.s32.totalorder %s3040_s10, %s2276_s15  ;;  %p2281_p10 = scmp.lt.s32.totalorder %s3040_s10, %s3100_s5 }
 0x1db   : > { %p2282_p11 = scmp.lt.s32.totalorder %s2280_s22, %s2276_s15 }
 0x1dc   : > { %p2278_p7 = pnand %p2277_p6, %p2417_p4 }
 0x1dd   : > { %p2283_p12 = por %p2282_p11, %p2281_p10 }
 0x1de   : > { %p2279_p9 = pneg %p2278_p7 }
 0x1e0   : > { %p2284_p13 = pnand %p2283_p12, %p2279_p9 }
 0x1e2   : > { %2287 = shalt.err (!%p2284_p13)
}
 0x1e3   : > { %s2345_s27 = smov 64   ;;  %s2346_s30 = smov 4  }
 0x1e4   : > { %2182 = dma.vmem_to_hbm [thread:$0]  (%p2417_p4), %s3042_s7, 2048, %s3040_s10, %s3050_s1, %s2345_s27, %s2345_s27, %s2346_s30  }
 0x1e5 PF: > { %p2188_p0 = scmp.ge.s32.totalorder %s2338_s21, 2  ;;  %s1758_s6 = sand.u32 1, %s2318_s18  }
 0x1e6   : > { %s1759_s8 = scalar_lea.sflag [#allocation3], %s1758_s6 }
 0x1e7   : > { %p2185_p1 = pnand %p2188_p0, %p2424_p8 }
 0x1e9   : > { %p2186_p2 = pneg %p2185_p1 }
 0x1eb   : > { %2313 = dma.done.wait (%p2186_p2), %s1759_s8, 2048  }
 0x1ec   : > { %2315 = vsyncadd (%p2186_p2), %s1759_s8, 4294965248  ;;  %s18_s21 = sadd.s32 1, %s2338_s21   ;;  %s3107_s18 = smov %s2322_s19 }
 0x1ed   : > { %p15_p3 = scmp.ge.s32.totalorder %s18_s21, 4   ;;  %s3108_s19 = smov %s2326_s20 }
 0x1ee   : > { %s3109_s20 = smov %s2430_s29  ;;  %s3110_s1 = smov %s2334_s2 }
 0x1ef   : > { %s3111_s2 = smov %s3113_s24  ;;  %17 = sbr.rel (!%p15_p3) target bundleno = 4 (0x4), region = 83 }
 0x1f4   :  { %1764 = vsyncpa [#allocation3], 1 }
 0x1f5   :  { %1766 = vsyncpa [#allocation3 + $0x1], 1 }

</bundles_post_ra>
